<compile_context>
chip_gen: v7x
topology: tpu7x:2x2x1
jax: 0.10.0
libtpu: 0.0.40
codegen_flags: <defaults>
</compile_context>

<pallas_src>
import math
from functools import partial

import jax
import jax.numpy as jnp
from jax import lax
from jax.experimental import pallas as pl
from jax.experimental.pallas import tpu as pltpu

LANE = 128
SUB = 8


def _round_up(x, m):
    return ((x + m - 1) // m) * m


def conv_matmul_kernel(p_ref, w_ref, b_ref, o_ref, ssq_ref, *,
                       w_scale, tm, tk, num_k_tiles, m_valid, need_mask, compute_ssq):
    """(tm, tk) x (tk, Cout_pad) MXU step with resident f32 output accumulation.

    Epilogue (bias + equalized scale + fused sum(x^2) partials) runs at the last K step.
    NOTE: grid ids are read only at the top level (never inside pl.when bodies).
    """
    k = pl.program_id(1) if num_k_tiles > 1 else None
    row0 = pl.program_id(0) * tm if need_mask else 0

    if num_k_tiles == 1:
        acc = jnp.dot(p_ref[...], w_ref[...], preferred_element_type=jnp.float32)
    else:
        # Resident weight: slice the K-chunk in VMEM (k*tk is a multiple of 128 -> aligned).
        dot_res = jnp.dot(p_ref[...], w_ref[pl.ds(k * tk, tk), :],
                          preferred_element_type=jnp.float32)

        @pl.when(k == 0)
        def _first():
            o_ref[...] = dot_res

        @pl.when(k > 0)
        def _rest():
            o_ref[...] += dot_res

    def _finalize():
        y = acc if num_k_tiles == 1 else o_ref[...]
        # Module order: (conv + bias) * w_scale  (the PyTorch module scales the whole conv output).
        y = (y + b_ref[...]) * w_scale
        o_ref[...] = y
        if compute_ssq:
            ysq = y * y
            if need_mask:
                # Padded M rows carry bias*w_scale -> exclude them from the global statistic.
                row = row0 + lax.broadcasted_iota(jnp.int32, (tm, 1), 0)
                ysq = jnp.where(row < m_valid, ysq, 0.0)
            # Aligned partial reduction: 128-wide lane groups, then 8-row sublane groups.
            # Pure vreg adds on the VPU; the final scalar sum is done outside the kernel.
            # Padded Cout columns are exactly zero (zero-padded weight & bias).
            part = ysq.reshape(tm, -1, LANE).sum(axis=1)                    # (tm, 128)
            ssq_ref[...] = part.reshape(tm // SUB, SUB, LANE).sum(axis=0)   # (8, 128)
        else:
            ssq_ref[...] = jnp.zeros_like(ssq_ref)

    if num_k_tiles == 1:
        _finalize()
    else:
        pl.when(k == num_k_tiles - 1)(_finalize)


def _im2col_nhwc(x_nchw, K, stride, padding):
    """(N*Ho*Wo, K*K*Cin) patches built directly in NHWC order (single 1x transpose)."""
    N, C, H, W = x_nchw.shape
    x_nhwc = jnp.transpose(x_nchw, (0, 2, 3, 1))
    xp = jnp.pad(x_nhwc, ((0, 0), (padding, padding), (padding, padding), (0, 0)))
    Ho = (H + 2 * padding - K) // stride + 1
    Wo = (W + 2 * padding - K) // stride + 1
    taps = [xp[:, kh:kh + (Ho - 1) * stride + 1:stride,
               kw:kw + (Wo - 1) * stride + 1:stride, :]
            for kh in range(K) for kw in range(K)]
    p = jnp.stack(taps, axis=3)                              # (N, Ho, Wo, K*K, C)
    return p.reshape(N * Ho * Wo, K * K * C), Ho, Wo


def _pick_m_tiling(M):
    """Largest tile (>=128) dividing M, preferring an even tile count (v7x: 2 TensorCores)."""
    cands = (1024, 512, 256, 128)
    for t in cands:
        if M % t == 0 and (M // t) % 2 == 0:
            return t, M
    for t in cands:
        if M % t == 0 and M // t >= 2:
            return t, M
    if M <= 1024:
        m_pad = _round_up(M, SUB)
        return m_pad, m_pad                                  # single full block
    return 512, _round_up(M, 512)                            # rare fallback: pad M (masked)


def _pick_k_tiling(Kdim):
    """Single K step when small; otherwise the largest dividing multiple of 128 (no K padding)."""
    if Kdim <= 1152:
        return Kdim, Kdim
    for t in range(1024, 0, -128):
        if Kdim % t == 0:
            return t, Kdim
    return 512, _round_up(Kdim, 512)                         # rare fallback: pad K with zeros


@partial(jax.jit, static_argnames=("stride", "padding", "eps",
                                   "use_equalize", "use_norm", "use_pixel_norm"))
def equalized_conv2d(x, weight, bias, *, stride=1, padding=1, eps=1e-8,
                     use_equalize=True, use_norm=True, use_pixel_norm=True):
    """x: (N, Cin, H, W) f32; weight: (Cout, Cin, K, K); bias: (Cout,). Returns NCHW f32."""
    # TODO(synk): BatchNorm2d branch (use_norm=True, use_pixel_norm=False) not implemented;
    # the module's default configuration uses PixelWiseNormalization, implemented below.
    if use_norm and not use_pixel_norm:
        raise NotImplementedError("BatchNorm2d normalization branch not implemented")

    N, Cin, H, W = x.shape
    Cout, _, K, _ = weight.shape
    w_scale = math.sqrt(2.0 / (Cin * K * K)) if use_equalize else 1.0

    # TODO(synk): im2col patches are still materialized in HBM (bf16, single NHWC transpose).
    # Fully fusing im2col into the kernel needs element-offset windows / manual slab DMA,
    # which is left out here to keep the kernel robust on the interpret/compile harness.
    patches, Ho, Wo = _im2col_nhwc(x.astype(jnp.bfloat16), K, stride, padding)
    M, Kdim = patches.shape
    # (Cout, Cin, K, K) -> (K, K, Cin, Cout) to match the (kh, kw, cin) patch column order.
    w_mat = jnp.transpose(weight.astype(jnp.bfloat16), (2, 3, 1, 0)).reshape(Kdim, Cout)

    # Lane-dense output: zero-pad Cout to a multiple of 128 so every store is a full vst.
    Cout_pad = _round_up(Cout, LANE)
    if Cout_pad != Cout:
        w_mat = jnp.pad(w_mat, ((0, 0), (0, Cout_pad - Cout)))
    b_mat = jnp.pad(bias.astype(jnp.float32), (0, Cout_pad - Cout)).reshape(1, Cout_pad)

    tk, Kdim_pad = _pick_k_tiling(Kdim)
    if Kdim_pad != Kdim:
        patches = jnp.pad(patches, ((0, 0), (0, Kdim_pad - Kdim)))
        w_mat = jnp.pad(w_mat, ((0, Kdim_pad - Kdim), (0, 0)))
    kt = Kdim_pad // tk

    tm, M_pad = _pick_m_tiling(M)
    if M_pad != M:
        patches = jnp.pad(patches, ((0, M_pad - M), (0, 0)))
    mt = M_pad // tm
    need_mask = (M_pad != M)

    kernel = partial(conv_matmul_kernel, w_scale=w_scale, tm=tm, tk=tk,
                     num_k_tiles=kt, m_valid=M, need_mask=need_mask,
                     compute_ssq=bool(use_norm))

    y_pad, partials = pl.pallas_call(
        kernel,
        out_shape=(
            jax.ShapeDtypeStruct((M_pad, Cout_pad), jnp.float32),     # conv output (pre-norm)
            jax.ShapeDtypeStruct((mt * SUB, LANE), jnp.float32),      # per-M-tile sum(x^2) partials
        ),
        grid=(mt, kt),
        in_specs=[
            pl.BlockSpec((tm, tk), lambda i, k: (i, k)),              # streamed patches
            pl.BlockSpec((Kdim_pad, Cout_pad), lambda i, k: (0, 0)),  # resident weight (bf16)
            pl.BlockSpec((1, Cout_pad), lambda i, k: (0, 0)),         # resident bias (f32)
        ],
        out_specs=(
            pl.BlockSpec((tm, Cout_pad), lambda i, k: (i, 0)),        # resident f32 accumulator
            pl.BlockSpec((SUB, LANE), lambda i, k: (i, 0)),
        ),
        compiler_params=pltpu.CompilerParams(
            dimension_semantics=("parallel", "arbitrary"),
            # Worst realistic footprint (tm=1024, Cout_pad=512, tk<=1152): ~15-20 MB,
            # well inside v7x's 64 MiB/TC; 48 MiB leaves headroom on every generation.
            vmem_limit_bytes=48 * 1024 * 1024,
        ),
    )(patches, w_mat, b_mat)

    y = y_pad[:M, :Cout]
    if use_norm:
        # Global PixelWiseNormalization: single scalar scale, applied in the JAX epilogue so XLA
        # fuses it into the slice + NHWC->NCHW transpose below (no extra full HBM pass).
        sumsq = jnp.sum(partials)
        inv = lax.rsqrt(sumsq / (M * Cout) + eps)
        y = y * inv
    y = y.reshape(N, Ho, Wo, Cout)
    return jnp.transpose(y, (0, 3, 1, 2))


if __name__ == "__main__":
    key = jax.random.PRNGKey(0)
    k1, k2, k3 = jax.random.split(key, 3)

    N, Cin, H, W = 2, 4, 16, 16
    Cout, K, stride, padding = 8, 3, 1, 1

    x = jax.random.normal(k1, (N, Cin, H, W), dtype=jnp.float32)
    weight = jax.random.normal(k2, (Cout, Cin, K, K), dtype=jnp.float32) * 0.1
    bias = jax.random.normal(k3, (Cout,), dtype=jnp.float32) * 0.1

    out = equalized_conv2d(x, weight, bias, stride=stride, padding=padding)
    out = jax.block_until_ready(out)

    # Pure-JAX reference (same bf16 operand quantization, f32 math).
    xq = x.astype(jnp.bfloat16).astype(jnp.float32)
    wq = weight.astype(jnp.bfloat16).astype(jnp.float32)
    y_ref = lax.conv_general_dilated(
        xq, wq, window_strides=(stride, stride),
        padding=((padding, padding), (padding, padding)),
        dimension_numbers=("NCHW", "OIHW", "NCHW"),
        precision=lax.Precision.HIGHEST)
    y_ref = (y_ref + bias[None, :, None, None]) * math.sqrt(2.0 / (Cin * K * K))
    y_ref = y_ref / jnp.sqrt(jnp.mean(y_ref ** 2) + 1e-8)

    assert out.shape == (N, Cout, H, W), out.shape
    max_err = float(jnp.max(jnp.abs(out - y_ref)))
    assert jnp.allclose(out, y_ref, atol=2e-3, rtol=2e-3), max_err

    print("KERNEL_OK")
</pallas_src>

<mosaic_0001>
module attributes {stable_mosaic.version = 11 : i64} {
  func.func @conv_matmul_kernel(%arg0: i32, %arg1: i32, %arg2: memref<256x36xbf16, #tpu.memory_space<vmem>>, %arg3: memref<36x128xbf16, #tpu.memory_space<vmem>>, %arg4: memref<1x128xf32, #tpu.memory_space<vmem>>, %arg5: memref<256x128xf32, #tpu.memory_space<vmem>>, %arg6: memref<8x128xf32, #tpu.memory_space<vmem>>) attributes {dimension_semantics = [#tpu.dimension_semantics<parallel>, #tpu.dimension_semantics<arbitrary>], iteration_bounds = array<i64: 2, 1>, scalar_prefetch = 0 : i64, scratch_operands = 0 : i64, tpu.core_type = #tpu.core_type<tc>, window_params = [{transform_indices = @transform_0, window_bounds = array<i64: 256, 36>}, {pipeline_mode = #tpu.pipeline_mode<synchronous>, transform_indices = @transform_1, window_bounds = array<i64: 36, 128>}, {pipeline_mode = #tpu.pipeline_mode<synchronous>, transform_indices = @transform_2, window_bounds = array<i64: 1, 128>}, {transform_indices = @transform_3, window_bounds = array<i64: 256, 128>}, {transform_indices = @transform_4, window_bounds = array<i64: 8, 128>}]} {
    %c0 = arith.constant 0 : index
    %c0_0 = arith.constant 0 : index
    %0 = vector.load %arg2[%c0, %c0_0] : memref<256x36xbf16, #tpu.memory_space<vmem>>, vector<256x36xbf16>
    %c0_1 = arith.constant 0 : index
    %c0_2 = arith.constant 0 : index
    %1 = vector.load %arg3[%c0_1, %c0_2] : memref<36x128xbf16, #tpu.memory_space<vmem>>, vector<36x128xbf16>
    %cst = arith.constant dense<0.000000e+00> : vector<256x128xf32>
    %2 = tpu.matmul %0, %1, %cst {dimension_numbers = #tpu.dot_dimension_numbers<[1], [0], [0], [1], [0, 0, 1, 1], [], []>} : vector<256x36xbf16>, vector<36x128xbf16>, vector<256x128xf32> -> vector<256x128xf32>
    %c0_3 = arith.constant 0 : index
    %c0_4 = arith.constant 0 : index
    %3 = vector.load %arg4[%c0_3, %c0_4] : memref<1x128xf32, #tpu.memory_space<vmem>>, vector<1x128xf32>
    %4 = vector.broadcast %3 : vector<1x128xf32> to vector<256x128xf32>
    %5 = arith.addf %2, %4 : vector<256x128xf32>
    %cst_5 = arith.constant 0.235702261 : f32
    %6 = vector.broadcast %cst_5 : f32 to vector<256x128xf32>
    %7 = arith.mulf %5, %6 : vector<256x128xf32>
    %c0_6 = arith.constant 0 : index
    %c0_7 = arith.constant 0 : index
    %8 = vector.load %arg5[%c0_6, %c0_7] : memref<256x128xf32, #tpu.memory_space<vmem>>, vector<256x128xf32>
    tpu.vector_store %arg5[%c0_6, %c0_7], %7 {strides = array<i32>} : memref<256x128xf32, #tpu.memory_space<vmem>>, vector<256x128xf32>,
    %9 = arith.mulf %7, %7 : vector<256x128xf32>
    %10 = vector.shape_cast %9 : vector<256x128xf32> to vector<256x1x128xf32>
    %cst_8 = arith.constant dense<0.000000e+00> : vector<256x128xf32>
    %11 = vector.multi_reduction <add>, %10, %cst_8 [1] : vector<256x1x128xf32> to vector<256x128xf32>
    %12 = vector.shape_cast %11 : vector<256x128xf32> to vector<32x8x128xf32>
    %cst_9 = arith.constant dense<0.000000e+00> : vector<8x128xf32>
    %13 = vector.multi_reduction <add>, %12, %cst_9 [0] : vector<32x8x128xf32> to vector<8x128xf32>
    %c0_10 = arith.constant 0 : index
    %c0_11 = arith.constant 0 : index
    %14 = vector.load %arg6[%c0_10, %c0_11] : memref<8x128xf32, #tpu.memory_space<vmem>>, vector<8x128xf32>
    tpu.vector_store %arg6[%c0_10, %c0_11], %13 {strides = array<i32>} : memref<8x128xf32, #tpu.memory_space<vmem>>, vector<8x128xf32>,
    return
  }
  func.func @transform_0(%arg0: i32, %arg1: i32) -> (i32, i32) {
    %c0_i32 = arith.constant 0 : i32
    return %arg0, %arg1 : i32, i32
  }
  func.func @transform_1(%arg0: i32, %arg1: i32) -> (i32, i32) {
    %c0_i32 = arith.constant 0 : i32
    %c0_i32_0 = arith.constant 0 : i32
    %c0_i32_1 = arith.constant 0 : i32
    return %c0_i32, %c0_i32_0 : i32, i32
  }
  func.func @transform_2(%arg0: i32, %arg1: i32) -> (i32, i32) {
    %c0_i32 = arith.constant 0 : i32
    %c0_i32_0 = arith.constant 0 : i32
    %c0_i32_1 = arith.constant 0 : i32
    return %c0_i32, %c0_i32_0 : i32, i32
  }
  func.func @transform_3(%arg0: i32, %arg1: i32) -> (i32, i32) {
    %c0_i32 = arith.constant 0 : i32
    %c0_i32_0 = arith.constant 0 : i32
    return %arg0, %c0_i32 : i32, i32
  }
  func.func @transform_4(%arg0: i32, %arg1: i32) -> (i32, i32) {
    %c0_i32 = arith.constant 0 : i32
    %c0_i32_0 = arith.constant 0 : i32
    return %arg0, %c0_i32 : i32, i32
  }
}

</mosaic_0001>

<bundles_post_ra>
// kernel: equalized_conv2d.1
= control target key start
LH: loop header
LB: loop body
LE: loop exit
PB: predicated region body
PF: predicated region fallthrough
CT: control target
= control target key end

     0   :  { %s1053_s15 = smov 0   ;;  %s1055_s16 = smov 0   ;;  %s1267_s0 = inlined_call_operand.vmem [shape: bf16[512,36], index: 0, kind: input, shape index: {}]   ;;  %s1268_s1 = inlined_call_operand.vmem [shape: bf16[36,128], index: 1, kind: input, shape index: {}]   ;;  %s1269_s2 = inlined_call_operand.vmem [shape: f32[1,128], index: 2, kind: input, shape index: {}]   ;;  %s1270_s3 = inlined_call_operand.vmem [shape: f32[512,128], index: 3, kind: output, shape index: {0}]   ;;  %s1271_s4 = inlined_call_operand.vmem [shape: f32[16,128], index: 4, kind: output, shape index: {1}]  }
   0x1   :  { %s1057_s17 = smov 0  }
   0x2 LB: > { %s27_s18 = sadd.s32 1, %s1022_s16  ;;  %p852_p0 = scmp.ge.s32.totalorder %s1026_s17, 1  ;;  %s1026_s17 = sphi %s1057_s17, %s15_s17   ;;  %s1022_s16 = sphi %s1055_s16, %s1273_s16   ;;  %s1018_s15 = sphi %s1053_s15, %s1272_s15  }
   0x3   : > { %p29_p1 = scmp.ge.s32.totalorder %s27_s18, 2  ;;  %p183_p2 = scmp.lt.s32.totalorder %s1026_s17, 3 }
   0x5   : > { %s1275_s18 = smov (%p29_p1, %s27_s18), 0  ;;  %p184_p3 = pnand %p852_p0, %p183_p2 }
   0x6   : > { %v985_v0 = vld [vmem:[%s1268_s1] sm:$0xff] (!%p184_p3)   ;;  %v986_v1 = vld [vmem:[%s1268_s1 + $0x8] sm:$0xff] (!%p184_p3)   ;;  %s853_s23 = sshll.u32 (!%p184_p3), %s1018_s15, 5  ;;  %v987_v2 = vld [vmem:[%s1268_s1 + $0x10] ss:$0 sps:$4 sm:$0x33] (!%p184_p3)  }
   0x7   : > { %187 = sbr.rel (%p184_p3) target bundleno = 303 (0x12f), region = 32  ;;  %915 = vmatprep.subr.bf16.mxu0 (!%p184_p3), %v985_v0  ;;  %p217_p4 = scmp.lt.s32.totalorder (!%p184_p3), %s853_s23, 63  ;;  %953 = vmatprep.subr.bf16.mxu1 (!%p184_p3), %v985_v0  ;;  %vm424_vm0 = vcmask (!%p184_p3), 1041408   ;;  %vm375_vm1 = vcmask (!%p184_p3), 293888   ;;  %v1126_v20 = vld [vmem:[%s1269_s2] ss:$0 sm:$0xff] (!%p184_p3) }
   0x8   : > { %916 = vmatpush3.bf16.msra.mxu0 (!%p184_p3), %v985_v0  ;;  %956 = vmatpush3.bf16.msra.mxu1 (!%p184_p3), %v985_v0  ;;  %v426_v3 = vsel (!%p184_p3), %vm424_vm0, %v987_v2, 0  ;;  %p231_p5 = scmp.lt.s32.totalorder (!%p184_p3), %s1018_s15, 1 }
   0x9   : > { %917 = vmatprep.subr.bf16.mxu0 (!%p184_p3), %v986_v1  ;;  %954 = vmatprep.subr.bf16.mxu1 (!%p184_p3), %v986_v1 }
   0xc   : > { %918 = vmatpush3.bf16.msra.mxu0 (!%p184_p3), %v986_v1  ;;  %957 = vmatpush3.bf16.msra.mxu1 (!%p184_p3), %v986_v1 }
   0xd   : > { %959 = vmatprep.subr.msk.bf16.mxu0 (!%p184_p3), %vm424_vm0, %v987_v2  ;;  %960 = vmatprep.subr.msk.bf16.mxu1 (!%p184_p3), %vm424_vm0, %v987_v2 }
   0xe   : > { %s1277_s23 = smov (!%p217_p4, %s853_s23), 63  ;;  %s1279_s15 = smov (!%p231_p5, %s1018_s15), 1 }
   0xf   : > { %s854_s26 = sshll.u32 %s1277_s23, 2  ;;  %s856_s6 = sshll.u32 %s1277_s23, 3 }
  0x10   : > { %s1089_s29 = scalar_lea.vmem %s1267_s0, %s854_s26  ;;  %920 = vmatpush3.bf16.msra.mxu0 %v426_v3  ;;  %958 = vmatpush3.bf16.msra.mxu1 %v426_v3  ;;  %s1133_s9 = scalar_lea.vmem %s1270_s3, %s856_s6 }
  0x11   : > { %v988_v4 = vld [vmem:[%s1089_s29] sm:$0xff]   ;;  %v989_v5 = vld [vmem:[%s1089_s29 + $0x8] sm:$0xff]   ;;  %v990_v6 = vld [vmem:[%s1089_s29 + $0x10] sm:$0xff]   ;;  %s857_s10 = sshll.u32 %s1279_s15, 3 }
  0x12   : > { %921 = vmatprep.mubr.msk.bf16.mxu0 %vm375_vm1, %v988_v4  ;;  %v991_v7 = vld [vmem:[%s1089_s29 + $0x18] sm:$0xff]   ;;  %v996_v8 = vld [vmem:[%s1089_s29 + $0x40] sm:$0xff]   ;;  %v997_v9 = vld [vmem:[%s1089_s29 + $0x48] sm:$0xff]   ;;  %s234_s13 = scalar_lea.vmem %s1271_s4, %s857_s10 }
  0x13   : > { %922 = vmatmul.mubr.msk.bf16.vlgmr.msra.gmra.mrb[0].mxu0 %vm375_vm1, %v989_v5  ;;  %937 = vmatprep.mubr.msk.bf16.mxu1 %vm375_vm1, %v996_v8  ;;  %v998_v10 = vld [vmem:[%s1089_s29 + $0x50] sm:$0xff]   ;;  %v992_v11 = vld [vmem:[%s1089_s29 + $0x20] sm:$0xff]   ;;  %v999_v12 = vld [vmem:[%s1089_s29 + $0x58] sm:$0xff]  }
  0x14   : > { %925 = vmatprep.mubr.msk.bf16.mxu0 %vm375_vm1, %v990_v6  ;;  %938 = vmatmul.mubr.msk.bf16.vlgmr.msra.gmra.mrb[0].mxu1 %vm375_vm1, %v997_v9  ;;  %v1000_v13 = vld [vmem:[%s1089_s29 + $0x60] sm:$0xff]   ;;  %v993_v14 = vld [vmem:[%s1089_s29 + $0x28] sm:$0xff]   ;;  %v994_v15 = vld [vmem:[%s1089_s29 + $0x30] sm:$0xff]  }
  0x15   : > { %941 = vmatprep.mubr.msk.bf16.mxu1 %vm375_vm1, %v998_v10  ;;  %v1001_v16 = vld [vmem:[%s1089_s29 + $0x68] sm:$0xff]   ;;  %v1002_v17 = vld [vmem:[%s1089_s29 + $0x70] sm:$0xff]   ;;  %v995_v18 = vld [vmem:[%s1089_s29 + $0x38] sm:$0xff]  }
  0x16   : > { %v1003_v19 = vld [vmem:[%s1089_s29 + $0x78] sm:$0xff]  }
  0x1b   : > { %926 = vmatmul.mubr.msk.bf16.gmra.mrb[4].mxu0 %vm375_vm1, %v991_v7 }
  0x1c   : > { %929 = vmatprep.mubr.msk.bf16.mxu0 %vm375_vm1, %v992_v11  ;;  %942 = vmatmul.mubr.msk.bf16.gmra.mrb[4].mxu1 %vm375_vm1, %v999_v12 }
  0x1d   : > { %945 = vmatprep.mubr.msk.bf16.mxu1 %vm375_vm1, %v1000_v13 }
  0x23   : > { %930 = vmatmul.mubr.msk.bf16.gmra.mrb[8].mxu0 %vm375_vm1, %v993_v14 }
  0x24   : > { %933 = vmatprep.mubr.msk.bf16.mxu0 %vm375_vm1, %v994_v15  ;;  %946 = vmatmul.mubr.msk.bf16.gmra.mrb[8].mxu1 %vm375_vm1, %v1001_v16 }
  0x25   : > { %949 = vmatprep.mubr.msk.bf16.mxu1 %vm375_vm1, %v1002_v17 }
  0x2b   : > { %934 = vmatmul.mubr.msk.bf16.gmra.mrb[12].mxu0 %vm375_vm1, %v995_v18 }
  0x2c   : > { %950 = vmatmul.mubr.msk.bf16.gmra.mrb[12].mxu1 %vm375_vm1, %v1003_v19 }
  0xe6   : > { %v923_v21 = vpop.f32.mrb[0].mxu0 }
  0xe7   : > { %v471_v22 = vadd.f32 %v923_v21, %v1126_v20  ;;  %v462_v23 = vpop.f32.mrb[1].mxu0  ;;  %v939_v32 = vpop.f32.mrb[0].mxu1 }
  0xe8   : > { %v463_v24 = vadd.f32 %v1126_v20, %v462_v23  ;;  %v924_v25 = vpop.f32.mrb[2].mxu0  ;;  %v535_v34 = vadd.f32 %v939_v32, %v1126_v20  ;;  %v526_v35 = vpop.f32.mrb[1].mxu1 }
  0xe9   : > { %v591_v26 = vmul.f32 0.23570226, %v471_v22  ;;  %v474_v27 = vadd.f32 %v924_v25, %v1126_v20  ;;  %v465_v28 = vpop.f32.mrb[3].mxu0  ;;  %v527_v36 = vadd.f32 %v1126_v20, %v526_v35  ;;  %v940_v37 = vpop.f32.mrb[2].mxu1 }
  0xea   : > { %v589_v29 = vmul.f32 0.23570226, %v463_v24  ;;  %v466_v30 = vadd.f32 %v1126_v20, %v465_v28  ;;  %v1144_v41 = vmul.f32 0.23570226, %v535_v34  ;;  %v538_v42 = vadd.f32 %v940_v37, %v1126_v20  ;;  %v529_v43 = vpop.f32.mrb[3].mxu1 }
  0xeb   : > { %623 = vst [vmem:[%s1133_s9 + $0x10] sm:$0xff] %v591_v26  ;;  %v592_v31 = vmul.f32 0.23570226, %v474_v27  ;;  %v1148_v46 = vmul.f32 0.23570226, %v527_v36  ;;  %v530_v47 = vadd.f32 %v1126_v20, %v529_v43  ;;  %v655_v48 = vmul.f32 %v591_v26, %v591_v26 }
  0xec   : > { %621 = vst [vmem:[%s1133_s9] sm:$0xff] %v589_v29  ;;  %v590_v33 = vmul.f32 0.23570226, %v466_v30  ;;  %v653_v38 = vmul.f32 %v589_v29, %v589_v29  ;;  %639 = vst [vmem:[%s1133_s9 + $0x90] sm:$0xff] %v1144_v41  ;;  %v1154_v52 = vmul.f32 0.23570226, %v538_v42 }
  0xed   : > { %624 = vst [vmem:[%s1133_s9 + $0x18] sm:$0xff] %v592_v31  ;;  %637 = vst [vmem:[%s1133_s9 + $0x80] sm:$0xff] %v1148_v46  ;;  %v1159_v56 = vmul.f32 0.23570226, %v530_v47  ;;  %v656_v57 = vmul.f32 %v592_v31, %v592_v31 }
  0xee   : > { %622 = vst [vmem:[%s1133_s9 + $0x8] sm:$0xff] %v590_v33  ;;  %v654_v39 = vmul.f32 %v590_v33, %v590_v33  ;;  %v927_v40 = vpop.f32.mrb[4].mxu0  ;;  %640 = vst [vmem:[%s1133_s9 + $0x98] sm:$0xff] %v1154_v52 }
  0xef   : > { %v487_v44 = vadd.f32 %v927_v40, %v1126_v20  ;;  %v478_v45 = vpop.f32.mrb[5].mxu0  ;;  %638 = vst [vmem:[%s1133_s9 + $0x88] sm:$0xff] %v1159_v56  ;;  %v943_v62 = vpop.f32.mrb[4].mxu1 }
  0xf0   : > { %v717_v49 = vadd.f32 %v654_v39, %v653_v38  ;;  %v479_v50 = vadd.f32 %v1126_v20, %v478_v45  ;;  %v928_v51 = vpop.f32.mrb[6].mxu0  ;;  %v551_v2 = vadd.f32 %v943_v62, %v1126_v20  ;;  %v542_v3 = vpop.f32.mrb[5].mxu1 }
  0xf1   : > { %v595_v53 = vmul.f32 0.23570226, %v487_v44  ;;  %v490_v54 = vadd.f32 %v928_v51, %v1126_v20  ;;  %v481_v55 = vpop.f32.mrb[7].mxu0  ;;  %v543_v4 = vadd.f32 %v1126_v20, %v542_v3  ;;  %v944_v5 = vpop.f32.mrb[6].mxu1 }
  0xf2   : > { %v718_v58 = vadd.f32 %v717_v49, %v655_v48  ;;  %v593_v59 = vmul.f32 0.23570226, %v479_v50  ;;  %v482_v60 = vadd.f32 %v1126_v20, %v481_v55  ;;  %v1172_v9 = vmul.f32 0.23570226, %v551_v2  ;;  %v545_v11 = vpop.f32.mrb[7].mxu1 }
  0xf3   : > { %627 = vst [vmem:[%s1133_s9 + $0x30] sm:$0xff] %v595_v53  ;;  %v596_v61 = vmul.f32 0.23570226, %v490_v54  ;;  %v554_v10 = vadd.f32 %v944_v5, %v1126_v20  ;;  %v1176_v14 = vmul.f32 0.23570226, %v543_v4  ;;  %v546_v15 = vadd.f32 %v1126_v20, %v545_v11 }
  0xf4   : > { %625 = vst [vmem:[%s1133_s9 + $0x20] sm:$0xff] %v593_v59  ;;  %v657_v63 = vmul.f32 %v593_v59, %v593_v59  ;;  %v719_v0 = vadd.f32 %v718_v58, %v656_v57  ;;  %v594_v1 = vmul.f32 0.23570226, %v482_v60  ;;  %v659_v16 = vmul.f32 %v595_v53, %v595_v53  ;;  %643 = vst [vmem:[%s1133_s9 + $0xb0] sm:$0xff] %v1172_v9 }
  0xf5   : > { %628 = vst [vmem:[%s1133_s9 + $0x38] sm:$0xff] %v596_v61  ;;  %v1182_v21 = vmul.f32 0.23570226, %v554_v10  ;;  %641 = vst [vmem:[%s1133_s9 + $0xa0] sm:$0xff] %v1176_v14  ;;  %v1187_v25 = vmul.f32 0.23570226, %v546_v15  ;;  %v660_v26 = vmul.f32 %v596_v61, %v596_v61 }
  0xf6   : > { %v720_v6 = vadd.f32 %v719_v0, %v657_v63  ;;  %626 = vst [vmem:[%s1133_s9 + $0x28] sm:$0xff] %v594_v1  ;;  %v658_v7 = vmul.f32 %v594_v1, %v594_v1  ;;  %v931_v8 = vpop.f32.mrb[8].mxu0 }
  0xf7   : > { %v503_v12 = vadd.f32 %v931_v8, %v1126_v20  ;;  %v494_v13 = vpop.f32.mrb[9].mxu0  ;;  %644 = vst [vmem:[%s1133_s9 + $0xb8] sm:$0xff] %v1182_v21  ;;  %642 = vst [vmem:[%s1133_s9 + $0xa8] sm:$0xff] %v1187_v25  ;;  %v947_v31 = vpop.f32.mrb[8].mxu1 }
  0xf8   : > { %v721_v17 = vadd.f32 %v720_v6, %v658_v7  ;;  %v495_v18 = vadd.f32 %v1126_v20, %v494_v13  ;;  %v932_v19 = vpop.f32.mrb[10].mxu0  ;;  %v567_v35 = vadd.f32 %v947_v31, %v1126_v20  ;;  %v558_v36 = vpop.f32.mrb[9].mxu1 }
  0xf9   : > { %v599_v22 = vmul.f32 0.23570226, %v503_v12  ;;  %v506_v23 = vadd.f32 %v932_v19, %v1126_v20  ;;  %v497_v24 = vpop.f32.mrb[11].mxu0  ;;  %v559_v37 = vadd.f32 %v1126_v20, %v558_v36  ;;  %v948_v38 = vpop.f32.mrb[10].mxu1  ;;  %v673_v36 = vmul.f32 %v1176_v14, %v1176_v14 }
  0xfa   : > { %v722_v27 = vadd.f32 %v721_v17, %v659_v16  ;;  %v597_v28 = vmul.f32 0.23570226, %v495_v18  ;;  %v498_v29 = vadd.f32 %v1126_v20, %v497_v24  ;;  %v1200_v43 = vmul.f32 0.23570226, %v567_v35  ;;  %v561_v45 = vpop.f32.mrb[11].mxu1 }
  0xfb   : > { %631 = vst [vmem:[%s1133_s9 + $0x50] sm:$0xff] %v599_v22  ;;  %v600_v30 = vmul.f32 0.23570226, %v506_v23  ;;  %v570_v44 = vadd.f32 %v948_v38, %v1126_v20  ;;  %v1204_v49 = vmul.f32 0.23570226, %v559_v37  ;;  %v562_v50 = vadd.f32 %v1126_v20, %v561_v45 }
  0xfc   : > { %629 = vst [vmem:[%s1133_s9 + $0x40] sm:$0xff] %v597_v28  ;;  %v661_v32 = vmul.f32 %v597_v28, %v597_v28  ;;  %v723_v33 = vadd.f32 %v722_v27, %v660_v26  ;;  %v598_v34 = vmul.f32 0.23570226, %v498_v29  ;;  %v663_v51 = vmul.f32 %v599_v22, %v599_v22  ;;  %647 = vst [vmem:[%s1133_s9 + $0xd0] sm:$0xff] %v1200_v43 }
  0xfd   : > { %632 = vst [vmem:[%s1133_s9 + $0x58] sm:$0xff] %v600_v30  ;;  %v1210_v57 = vmul.f32 0.23570226, %v570_v44  ;;  %645 = vst [vmem:[%s1133_s9 + $0xc0] sm:$0xff] %v1204_v49  ;;  %v614_v61 = vmul.f32 0.23570226, %v562_v50  ;;  %v664_v62 = vmul.f32 %v600_v30, %v600_v30  ;;  %v669_v29 = vmul.f32 %v1148_v46, %v1148_v46 }
  0xfe   : > { %v724_v39 = vadd.f32 %v723_v33, %v661_v32  ;;  %630 = vst [vmem:[%s1133_s9 + $0x48] sm:$0xff] %v598_v34  ;;  %v662_v40 = vmul.f32 %v598_v34, %v598_v34  ;;  %v935_v42 = vpop.f32.mrb[12].mxu0  ;;  %v670_v32 = vmul.f32 %v1159_v56, %v1159_v56  ;;  %v672_v34 = vmul.f32 %v1154_v52, %v1154_v52 }
  0xff   : > { %v519_v47 = vadd.f32 %v935_v42, %v1126_v20  ;;  %v510_v48 = vpop.f32.mrb[13].mxu0  ;;  %648 = vst [vmem:[%s1133_s9 + $0xd8] sm:$0xff] %v1210_v57  ;;  %646 = vst [vmem:[%s1133_s9 + $0xc8] sm:$0xff] %v614_v61  ;;  %v951_v3 = vpop.f32.mrb[12].mxu1  ;;  %v674_v38 = vmul.f32 %v1187_v25, %v1187_v25  ;;  %v675_v56 = vmul.f32 %v1172_v9, %v1172_v9 }
 0x100   : > { %v725_v53 = vadd.f32 %v724_v39, %v662_v40  ;;  %v511_v54 = vadd.f32 %v1126_v20, %v510_v48  ;;  %v936_v55 = vpop.f32.mrb[14].mxu0  ;;  %v583_v7 = vadd.f32 %v951_v3, %v1126_v20  ;;  %v574_v8 = vpop.f32.mrb[13].mxu1  ;;  %v677_v52 = vmul.f32 %v1204_v49, %v1204_v49 }
 0x101   : > { %v603_v58 = vmul.f32 0.23570226, %v519_v47  ;;  %v522_v59 = vadd.f32 %v936_v55, %v1126_v20  ;;  %v513_v60 = vpop.f32.mrb[15].mxu0  ;;  %v575_v10 = vadd.f32 %v1126_v20, %v574_v8  ;;  %v952_v11 = vpop.f32.mrb[14].mxu1  ;;  %v678_v14 = vmul.f32 %v614_v61, %v614_v61 }
 0x102   : > { %v726_v63 = vadd.f32 %v725_v53, %v663_v51  ;;  %v601_v0 = vmul.f32 0.23570226, %v511_v54  ;;  %v514_v1 = vadd.f32 %v1126_v20, %v513_v60  ;;  %v619_v15 = vmul.f32 0.23570226, %v583_v7  ;;  %v577_v17 = vpop.f32.mrb[15].mxu1 }
 0x103   : > { %635 = vst [vmem:[%s1133_s9 + $0x70] sm:$0xff] %v603_v58  ;;  %v604_v2 = vmul.f32 0.23570226, %v522_v59  ;;  %v586_v16 = vadd.f32 %v952_v11, %v1126_v20  ;;  %v617_v18 = vmul.f32 0.23570226, %v575_v10  ;;  %v578_v19 = vadd.f32 %v1126_v20, %v577_v17 }
 0x104   : > { %633 = vst [vmem:[%s1133_s9 + $0x60] sm:$0xff] %v601_v0  ;;  %v665_v4 = vmul.f32 %v601_v0, %v601_v0  ;;  %v727_v5 = vadd.f32 %v726_v63, %v664_v62  ;;  %v602_v6 = vmul.f32 0.23570226, %v514_v1  ;;  %v667_v22 = vmul.f32 %v603_v58, %v603_v58  ;;  %651 = vst [vmem:[%s1133_s9 + $0xf0] sm:$0xff] %v619_v15 }
 0x105   : > { %636 = vst [vmem:[%s1133_s9 + $0x78] sm:$0xff] %v604_v2  ;;  %v620_v24 = vmul.f32 0.23570226, %v586_v16  ;;  %649 = vst [vmem:[%s1133_s9 + $0xe0] sm:$0xff] %v617_v18  ;;  %v618_v26 = vmul.f32 0.23570226, %v578_v19  ;;  %v668_v27 = vmul.f32 %v604_v2, %v604_v2  ;;  %v671_v20 = vmul.f32 %v1144_v41, %v1144_v41 }
 0x106   : > { %v728_v12 = vadd.f32 %v727_v5, %v665_v4  ;;  %634 = vst [vmem:[%s1133_s9 + $0x68] sm:$0xff] %v602_v6  ;;  %v666_v13 = vmul.f32 %v602_v6, %v602_v6  ;;  %v676_v41 = vmul.f32 %v1182_v21, %v1182_v21  ;;  %v679_v45 = vmul.f32 %v1200_v43, %v1200_v43 }
 0x107   : > { %652 = vst [vmem:[%s1133_s9 + $0xf8] sm:$0xff] %v620_v24  ;;  %650 = vst [vmem:[%s1133_s9 + $0xe8] sm:$0xff] %v618_v26  ;;  %v680_v25 = vmul.f32 %v1210_v57, %v1210_v57  ;;  %v681_v48 = vmul.f32 %v617_v18, %v617_v18  ;;  %v682_v51 = vmul.f32 %v618_v26, %v618_v26 }
 0x108   : > { %v729_v23 = vadd.f32 %v728_v12, %v666_v13  ;;  %v683_v53 = vmul.f32 %v619_v15, %v619_v15  ;;  %v684_v54 = vmul.f32 %v620_v24, %v620_v24 }
 0x10a   : > { %v730_v28 = vadd.f32 %v729_v23, %v667_v22 }
 0x10c   : > { %v731_v30 = vadd.f32 %v730_v28, %v668_v27 }
 0x10e   : > { %v732_v31 = vadd.f32 %v731_v30, %v669_v29 }
 0x110   : > { %v733_v33 = vadd.f32 %v732_v31, %v670_v32 }
 0x112   : > { %v734_v35 = vadd.f32 %v733_v33, %v671_v20 }
 0x114   : > { %v735_v46 = vadd.f32 %v734_v35, %v672_v34 }
 0x116   : > { %v736_v37 = vadd.f32 %v735_v46, %v673_v36 }
 0x118   : > { %v737_v39 = vadd.f32 %v736_v37, %v674_v38 }
 0x11a   : > { %v738_v40 = vadd.f32 %v737_v39, %v675_v56 }
 0x11c   : > { %v739_v42 = vadd.f32 %v738_v40, %v676_v41 }
 0x11e   : > { %v740_v44 = vadd.f32 %v739_v42, %v677_v52 }
 0x120   : > { %v741_v47 = vadd.f32 %v740_v44, %v678_v14 }
 0x122   : > { %v742_v9 = vadd.f32 %v741_v47, %v679_v45 }
 0x124   : > { %v743_v50 = vadd.f32 %v742_v9, %v680_v25 }
 0x126   : > { %v744_v21 = vadd.f32 %v743_v50, %v681_v48 }
 0x128   : > { %v745_v49 = vadd.f32 %v744_v21, %v682_v51 }
 0x12a   : > { %v746_v55 = vadd.f32 %v745_v49, %v683_v53 }
 0x12c   : > { %v747_v43 = vadd.f32 %v746_v55, %v684_v54 }
 0x12e   : > { %748 = vst [vmem:[%s234_s13] sm:$0xff] %v747_v43 }
 0x12f PF: > { %s15_s17 = sadd.s32 1, %s1026_s17   ;;  %s1272_s15 = smov %s1022_s16 }
 0x130   : > { %p12_p6 = scmp.ge.s32.totalorder %s15_s17, 4   ;;  %s1273_s16 = smov %s1275_s18 }
 0x132   :  { %14 = sbr.rel (!%p12_p6) target bundleno = 2 (0x2), region = 74 }

</bundles_post_ra>
